<compile_context>
chip_gen: v6e
topology: v6e:2x2x1
jax: 0.10.0
libtpu: 0.0.40
codegen_flags: <defaults>
</compile_context>

<pallas_src>
import numpy as np
import jax
import jax.numpy as jnp
from jax import lax
from jax.experimental import pallas as pl
from jax.experimental.pallas import tpu as pltpu

BN_EPS = 1e-5
CHUNK = 128   # lane-aligned width of every slab chunk / padded feature block


# ----------------------------- fused Pallas kernel ---------------------------

def _make_fused_kernel(num_layers, chunk, out_pad):
    """Build the fused Generator kernel for `num_layers` residual blocks.

    Ref order: inp, w_0..w_{L-1}, w_final, vecs, out, slab_scratch.
      vecs rows: [gamma_0, beta_0, gamma_1, beta_1, ..., final_bias]  (f32)
      slab layout (all chunks 128 wide, bf16): [inp | h1 | h2 | ... | h_L]
    """
    def kernel(*refs):
        inp_ref = refs[0]
        w_refs = refs[1:1 + num_layers]
        wf_ref = refs[1 + num_layers]
        vecs_ref = refs[2 + num_layers]
        out_ref = refs[3 + num_layers]
        slab_ref = refs[4 + num_layers]

        # chunk 0 of the slab = (padded, bf16) initial input
        slab_ref[:, 0:chunk] = inp_ref[...]

        for k in range(num_layers):
            width = (k + 1) * chunk                        # static, 128-aligned
            xin = slab_ref[:, 0:width]                     # [B, width] bf16
            # bf16 x bf16 -> f32 accumulate on the MXU.  Linear bias omitted:
            # it cancels exactly against the BatchNorm mean subtraction.
            h = jnp.dot(xin, w_refs[k][...],
                        preferred_element_type=jnp.float32)
            # two-pass batch statistics (training mode, biased variance);
            # avoids the E[h^2] - mean^2 cancellation.
            mean = jnp.mean(h, axis=0, keepdims=True)
            diff = h - mean
            var = jnp.mean(diff * diff, axis=0, keepdims=True)
            gamma = vecs_ref[2 * k:2 * k + 1, 0:chunk]     # [1, chunk] f32
            beta = vecs_ref[2 * k + 1:2 * k + 2, 0:chunk]
            scale = gamma * lax.rsqrt(var + BN_EPS)        # folded BN affine
            act = jnp.maximum(diff * scale + beta, 0.0)
            slab_ref[:, width:width + chunk] = act.astype(slab_ref.dtype)

        bias_f = vecs_ref[2 * num_layers:2 * num_layers + 1, 0:out_pad]
        out_ref[...] = jnp.dot(slab_ref[...], wf_ref[...],
                               preferred_element_type=jnp.float32) + bias_f
    return kernel


def _full_spec(shape):
    # whole-array block (full dims satisfy the (8,128) rule), grid = ()
    return pl.BlockSpec(shape, lambda: tuple(0 for _ in shape))


# ----------------------------- parameter packing -----------------------------

def init_generator_params(key, latent_dim, input_dim, output_dim, generator_dim):
    """Synthetic params in the module's native layout.

    Weights are stored as [in, out]; row order of `in` follows the PyTorch
    forward's running concat order [h_{k-1}, ..., h_1, inp0].
    """
    params = {"residuals": []}
    dim = latent_dim + input_dim
    for o in generator_dim:
        key, kw, kb = jax.random.split(key, 3)
        params["residuals"].append({
            "w": jax.random.normal(kw, (dim, o), jnp.float32) * 0.1,
            "b": jax.random.normal(kb, (1, o), jnp.float32) * 0.1,
            "gamma": jnp.ones((1, o), jnp.float32),    # BatchNorm1d default init
            "beta": jnp.zeros((1, o), jnp.float32),
        })
        dim += o
    key, kw, kb = jax.random.split(key, 3)
    params["final"] = {
        "w": jax.random.normal(kw, (dim, output_dim), jnp.float32) * 0.1,
        "b": jax.random.normal(kb, (1, output_dim), jnp.float32) * 0.1,
    }
    return params


def pack_generator_params(params, latent_dim, input_dim, output_dim,
                          generator_dim, chunk=CHUNK):
    """Re-order weight rows into slab order [inp, h1, ..., h_{k-1}], zero-pad
    each chunk to 128 rows / 128-multiple columns, cast weights to bf16, and
    pack all per-layer vectors into one f32 array."""
    D0 = latent_dim + input_dim
    chunk_dims = [D0] + list(generator_dim)               # slab-order widths
    assert all(cd <= chunk for cd in chunk_dims), "feature chunk exceeds 128"
    L = len(generator_dim)
    out_pad = ((output_dim + chunk - 1) // chunk) * chunk
    vec_w = max(chunk, out_pad)

    def split_to_slab_order(W, k_chunks):
        # PyTorch row order for a layer consuming k_chunks chunks:
        # [h_{k-1}, ..., h_1, inp0]  ->  reverse to slab order.
        pt_sizes = [chunk_dims[j] for j in range(k_chunks - 1, 0, -1)] + [D0]
        splits = [int(s) for s in np.cumsum(pt_sizes)[:-1]]
        return jnp.split(W, splits, axis=0)[::-1]

    weights = []
    vec_rows = []
    for k in range(L):
        r = params["residuals"][k]
        O = generator_dim[k]
        blocks = split_to_slab_order(r["w"], k + 1)
        padded = [jnp.pad(blk, ((0, chunk - cd), (0, chunk - O)))
                  for blk, cd in zip(blocks, chunk_dims[:k + 1])]
        weights.append(jnp.concatenate(padded, axis=0).astype(jnp.bfloat16))
        # NOTE: r["b"] deliberately dropped (cancelled by BN mean subtraction).
        # gamma/beta padded with zeros -> padded feature columns stay exactly 0.
        vec_rows.append(jnp.pad(r["gamma"], ((0, 0), (0, vec_w - O))))
        vec_rows.append(jnp.pad(r["beta"], ((0, 0), (0, vec_w - O))))

    blocks = split_to_slab_order(params["final"]["w"], L + 1)
    padded = [jnp.pad(blk, ((0, chunk - cd), (0, out_pad - output_dim)))
              for blk, cd in zip(blocks, chunk_dims)]
    final_w = jnp.concatenate(padded, axis=0).astype(jnp.bfloat16)
    vec_rows.append(jnp.pad(params["final"]["b"],
                            ((0, 0), (0, vec_w - output_dim))))

    return {
        "weights": weights,                                # L x [(k+1)*128,128] bf16
        "final_w": final_w,                                # [(L+1)*128, out_pad] bf16
        "vecs": jnp.concatenate(vec_rows, axis=0),         # [2L+1, vec_w] f32
        "meta": dict(D0=D0, L=L, chunk=chunk, out_pad=out_pad,
                     output_dim=output_dim, n_chunks=L + 1),
    }


# ----------------------------- forward ---------------------------------------

def generator_forward(packed, noise, x):
    """noise: list of [B, *] arrays; x: list (possibly empty) of [B, *] arrays."""
    meta = packed["meta"]
    chunk, L, D0 = meta["chunk"], meta["L"], meta["D0"]
    out_pad, n_chunks = meta["out_pad"], meta["n_chunks"]

    inp = jnp.concatenate(noise, axis=1)
    if len(x) > 0:
        inp = jnp.concatenate([inp, jnp.concatenate(x, axis=1)], axis=1)
    B = inp.shape[0]
    assert inp.shape[1] == D0, (inp.shape, D0)
    # lane-align once; bf16 halves the input DMA and feeds the bf16 MXU path
    inp_pad = jnp.pad(inp, ((0, 0), (0, chunk - D0))).astype(jnp.bfloat16)

    args = [inp_pad] + list(packed["weights"]) + [packed["final_w"], packed["vecs"]]
    in_specs = [_full_spec(a.shape) for a in args]

    flops = sum(2 * B * (k + 1) * chunk * chunk for k in range(L))
    flops += 2 * B * n_chunks * chunk * out_pad
    bytes_accessed = sum(int(np.prod(a.shape)) * a.dtype.itemsize for a in args)
    bytes_accessed += B * out_pad * 4

    out = pl.pallas_call(
        _make_fused_kernel(L, chunk, out_pad),
        out_shape=jax.ShapeDtypeStruct((B, out_pad), jnp.float32),
        in_specs=in_specs,
        out_specs=_full_spec((B, out_pad)),
        scratch_shapes=[pltpu.VMEM((B, n_chunks * chunk), jnp.bfloat16)],
        cost_estimate=pl.CostEstimate(flops=flops,
                                      transcendentals=L * chunk,
                                      bytes_accessed=bytes_accessed),
    )(*args)
    return out[:, :meta["output_dim"]]


# ----------------------------- pure-JAX reference ----------------------------

def generator_forward_ref(params, noise, x):
    inp = jnp.concatenate(noise, axis=1)
    if len(x) > 0:
        inp = jnp.concatenate([inp, jnp.concatenate(x, axis=1)], axis=1)
    h = inp
    for r in params["residuals"]:
        z = h @ r["w"] + r["b"]
        m = z.mean(axis=0, keepdims=True)
        v = ((z - m) ** 2).mean(axis=0, keepdims=True)      # biased, training mode
        z = (z - m) * lax.rsqrt(v + BN_EPS) * r["gamma"] + r["beta"]
        h = jnp.concatenate([jnp.maximum(z, 0.0), h], axis=1)
    return h @ params["final"]["w"] + params["final"]["b"]


# ----------------------------- main -------------------------------------------

if __name__ == "__main__":
    B = 128              # amortizes launch/DMA overhead and fills MXU rows
    latent_dim = 16      # two noise chunks of 8
    input_dim = 8        # one conditional chunk of 8
    output_dim = 24
    generator_dim = (32, 32)

    key = jax.random.PRNGKey(0)
    key, k1, k2, k3, kp = jax.random.split(key, 5)
    noise = [jax.random.normal(k1, (B, 8), jnp.float32),
             jax.random.normal(k2, (B, 8), jnp.float32)]
    x = [jax.random.normal(k3, (B, input_dim), jnp.float32)]

    params = init_generator_params(kp, latent_dim, input_dim, output_dim,
                                   generator_dim)
    packed = pack_generator_params(params, latent_dim, input_dim, output_dim,
                                   generator_dim)

    out = generator_forward(packed, noise, x)
    out = jax.block_until_ready(out)
    assert out.shape == (B, output_dim), out.shape

    ref = jax.block_until_ready(generator_forward_ref(params, noise, x))
    # tolerance accounts for bf16 weight/activation storage (BN math stays f32)
    np.testing.assert_allclose(np.asarray(out), np.asarray(ref),
                               rtol=2e-2, atol=3e-2)
    print("KERNEL_OK")
</pallas_src>

<mosaic_0001>
module attributes {stable_mosaic.version = 11 : i64} {
  func.func @kernel(%arg0: memref<128x128xbf16, #tpu.memory_space<vmem>>, %arg1: memref<128x128xbf16, #tpu.memory_space<vmem>>, %arg2: memref<256x128xbf16, #tpu.memory_space<vmem>>, %arg3: memref<384x128xbf16, #tpu.memory_space<vmem>>, %arg4: memref<5x128xf32, #tpu.memory_space<vmem>>, %arg5: memref<128x128xf32, #tpu.memory_space<vmem>>, %arg6: memref<128x384xbf16, #tpu.memory_space<vmem>>) attributes {dimension_semantics = [], scalar_prefetch = 0 : i64, scratch_operands = 1 : i64, tpu.core_type = #tpu.core_type<tc>} {
    %c0 = arith.constant 0 : index
    %c0_0 = arith.constant 0 : index
    %0 = vector.load %arg0[%c0, %c0_0] : memref<128x128xbf16, #tpu.memory_space<vmem>>, vector<128x128xbf16>
    %c0_1 = arith.constant 0 : index
    %c0_2 = arith.constant 0 : index
    %1 = vector.load %arg6[%c0_1, %c0_2] : memref<128x384xbf16, #tpu.memory_space<vmem>>, vector<128x128xbf16>
    tpu.vector_store %arg6[%c0_1, %c0_2], %0 {strides = array<i32>} : memref<128x384xbf16, #tpu.memory_space<vmem>>, vector<128x128xbf16>,
    %c0_3 = arith.constant 0 : index
    %c0_4 = arith.constant 0 : index
    %2 = vector.load %arg6[%c0_3, %c0_4] : memref<128x384xbf16, #tpu.memory_space<vmem>>, vector<128x128xbf16>
    %c0_5 = arith.constant 0 : index
    %c0_6 = arith.constant 0 : index
    %3 = vector.load %arg1[%c0_5, %c0_6] : memref<128x128xbf16, #tpu.memory_space<vmem>>, vector<128x128xbf16>
    %cst = arith.constant dense<0.000000e+00> : vector<128x128xf32>
    %4 = tpu.matmul %2, %3, %cst {dimension_numbers = #tpu.dot_dimension_numbers<[1], [0], [0], [1], [0, 0, 1, 1], [], []>} : vector<128x128xbf16>, vector<128x128xbf16>, vector<128x128xf32> -> vector<128x128xf32>
    %cst_7 = arith.constant dense<0.000000e+00> : vector<128xf32>
    %5 = vector.multi_reduction <add>, %4, %cst_7 [0] : vector<128x128xf32> to vector<128xf32>
    %6 = vector.shape_cast %5 : vector<128xf32> to vector<1x128xf32>
    %cst_8 = arith.constant 1.280000e+02 : f32
    %7 = vector.broadcast %cst_8 : f32 to vector<1x128xf32>
    %8 = arith.divf %6, %7 : vector<1x128xf32>
    %9 = vector.broadcast %8 : vector<1x128xf32> to vector<128x128xf32>
    %10 = arith.subf %4, %9 : vector<128x128xf32>
    %11 = arith.mulf %10, %10 : vector<128x128xf32>
    %cst_9 = arith.constant dense<0.000000e+00> : vector<128xf32>
    %12 = vector.multi_reduction <add>, %11, %cst_9 [0] : vector<128x128xf32> to vector<128xf32>
    %13 = vector.shape_cast %12 : vector<128xf32> to vector<1x128xf32>
    %cst_10 = arith.constant 1.280000e+02 : f32
    %14 = vector.broadcast %cst_10 : f32 to vector<1x128xf32>
    %15 = arith.divf %13, %14 : vector<1x128xf32>
    %c0_11 = arith.constant 0 : index
    %c0_12 = arith.constant 0 : index
    %16 = vector.load %arg4[%c0_11, %c0_12] : memref<5x128xf32, #tpu.memory_space<vmem>>, vector<1x128xf32>
    %c1 = arith.constant 1 : index
    %c0_13 = arith.constant 0 : index
    %17 = vector.load %arg4[%c1, %c0_13] : memref<5x128xf32, #tpu.memory_space<vmem>>, vector<1x128xf32>
    %cst_14 = arith.constant 9.99999974E-6 : f32
    %18 = vector.broadcast %cst_14 : f32 to vector<1x128xf32>
    %19 = arith.addf %15, %18 : vector<1x128xf32>
    %20 = math.rsqrt %19 : vector<1x128xf32>
    %21 = arith.mulf %16, %20 : vector<1x128xf32>
    %22 = vector.broadcast %21 : vector<1x128xf32> to vector<128x128xf32>
    %23 = arith.mulf %10, %22 : vector<128x128xf32>
    %24 = vector.broadcast %17 : vector<1x128xf32> to vector<128x128xf32>
    %25 = arith.addf %23, %24 : vector<128x128xf32>
    %cst_15 = arith.constant 0.000000e+00 : f32
    %26 = vector.broadcast %cst_15 : f32 to vector<128x128xf32>
    %27 = arith.maximumf %25, %26 : vector<128x128xf32>
    %28 = arith.truncf %27 : vector<128x128xf32> to vector<128x128xbf16>
    %c0_16 = arith.constant 0 : index
    %c128 = arith.constant 128 : index
    %29 = vector.load %arg6[%c0_16, %c128] : memref<128x384xbf16, #tpu.memory_space<vmem>>, vector<128x128xbf16>
    tpu.vector_store %arg6[%c0_16, %c128], %28 {strides = array<i32>} : memref<128x384xbf16, #tpu.memory_space<vmem>>, vector<128x128xbf16>,
    %c0_17 = arith.constant 0 : index
    %c0_18 = arith.constant 0 : index
    %30 = vector.load %arg6[%c0_17, %c0_18] : memref<128x384xbf16, #tpu.memory_space<vmem>>, vector<128x256xbf16>
    %c0_19 = arith.constant 0 : index
    %c0_20 = arith.constant 0 : index
    %31 = vector.load %arg2[%c0_19, %c0_20] : memref<256x128xbf16, #tpu.memory_space<vmem>>, vector<256x128xbf16>
    %cst_21 = arith.constant dense<0.000000e+00> : vector<128x128xf32>
    %32 = tpu.matmul %30, %31, %cst_21 {dimension_numbers = #tpu.dot_dimension_numbers<[1], [0], [0], [1], [0, 0, 1, 1], [], []>} : vector<128x256xbf16>, vector<256x128xbf16>, vector<128x128xf32> -> vector<128x128xf32>
    %cst_22 = arith.constant dense<0.000000e+00> : vector<128xf32>
    %33 = vector.multi_reduction <add>, %32, %cst_22 [0] : vector<128x128xf32> to vector<128xf32>
    %34 = vector.shape_cast %33 : vector<128xf32> to vector<1x128xf32>
    %cst_23 = arith.constant 1.280000e+02 : f32
    %35 = vector.broadcast %cst_23 : f32 to vector<1x128xf32>
    %36 = arith.divf %34, %35 : vector<1x128xf32>
    %37 = vector.broadcast %36 : vector<1x128xf32> to vector<128x128xf32>
    %38 = arith.subf %32, %37 : vector<128x128xf32>
    %39 = arith.mulf %38, %38 : vector<128x128xf32>
    %cst_24 = arith.constant dense<0.000000e+00> : vector<128xf32>
    %40 = vector.multi_reduction <add>, %39, %cst_24 [0] : vector<128x128xf32> to vector<128xf32>
    %41 = vector.shape_cast %40 : vector<128xf32> to vector<1x128xf32>
    %cst_25 = arith.constant 1.280000e+02 : f32
    %42 = vector.broadcast %cst_25 : f32 to vector<1x128xf32>
    %43 = arith.divf %41, %42 : vector<1x128xf32>
    %c2 = arith.constant 2 : index
    %c0_26 = arith.constant 0 : index
    %44 = vector.load %arg4[%c2, %c0_26] : memref<5x128xf32, #tpu.memory_space<vmem>>, vector<1x128xf32>
    %c3 = arith.constant 3 : index
    %c0_27 = arith.constant 0 : index
    %45 = vector.load %arg4[%c3, %c0_27] : memref<5x128xf32, #tpu.memory_space<vmem>>, vector<1x128xf32>
    %cst_28 = arith.constant 9.99999974E-6 : f32
    %46 = vector.broadcast %cst_28 : f32 to vector<1x128xf32>
    %47 = arith.addf %43, %46 : vector<1x128xf32>
    %48 = math.rsqrt %47 : vector<1x128xf32>
    %49 = arith.mulf %44, %48 : vector<1x128xf32>
    %50 = vector.broadcast %49 : vector<1x128xf32> to vector<128x128xf32>
    %51 = arith.mulf %38, %50 : vector<128x128xf32>
    %52 = vector.broadcast %45 : vector<1x128xf32> to vector<128x128xf32>
    %53 = arith.addf %51, %52 : vector<128x128xf32>
    %cst_29 = arith.constant 0.000000e+00 : f32
    %54 = vector.broadcast %cst_29 : f32 to vector<128x128xf32>
    %55 = arith.maximumf %53, %54 : vector<128x128xf32>
    %56 = arith.truncf %55 : vector<128x128xf32> to vector<128x128xbf16>
    %c0_30 = arith.constant 0 : index
    %c256 = arith.constant 256 : index
    %57 = vector.load %arg6[%c0_30, %c256] : memref<128x384xbf16, #tpu.memory_space<vmem>>, vector<128x128xbf16>
    tpu.vector_store %arg6[%c0_30, %c256], %56 {strides = array<i32>} : memref<128x384xbf16, #tpu.memory_space<vmem>>, vector<128x128xbf16>,
    %c4 = arith.constant 4 : index
    %c0_31 = arith.constant 0 : index
    %58 = vector.load %arg4[%c4, %c0_31] : memref<5x128xf32, #tpu.memory_space<vmem>>, vector<1x128xf32>
    %c0_32 = arith.constant 0 : index
    %c0_33 = arith.constant 0 : index
    %59 = vector.load %arg6[%c0_32, %c0_33] : memref<128x384xbf16, #tpu.memory_space<vmem>>, vector<128x384xbf16>
    %c0_34 = arith.constant 0 : index
    %c0_35 = arith.constant 0 : index
    %60 = vector.load %arg3[%c0_34, %c0_35] : memref<384x128xbf16, #tpu.memory_space<vmem>>, vector<384x128xbf16>
    %cst_36 = arith.constant dense<0.000000e+00> : vector<128x128xf32>
    %61 = tpu.matmul %59, %60, %cst_36 {dimension_numbers = #tpu.dot_dimension_numbers<[1], [0], [0], [1], [0, 0, 1, 1], [], []>} : vector<128x384xbf16>, vector<384x128xbf16>, vector<128x128xf32> -> vector<128x128xf32>
    %62 = vector.broadcast %58 : vector<1x128xf32> to vector<128x128xf32>
    %63 = arith.addf %61, %62 : vector<128x128xf32>
    %c0_37 = arith.constant 0 : index
    %c0_38 = arith.constant 0 : index
    %64 = vector.load %arg5[%c0_37, %c0_38] : memref<128x128xf32, #tpu.memory_space<vmem>>, vector<128x128xf32>
    tpu.vector_store %arg5[%c0_37, %c0_38], %63 {strides = array<i32>} : memref<128x128xf32, #tpu.memory_space<vmem>>, vector<128x128xf32>,
    return
  }
}

</mosaic_0001>

<bundles_post_ra>
// kernel: tpu_custom_call.1
= control target key start
LH: loop header
LB: loop body
LE: loop exit
PB: predicated region body
PF: predicated region fallthrough
CT: control target
= control target key end

     0   :  { %10 = vsyncpa [#allocation4], 0  ;;  %s2492_s0 = inlined_call_operand.hbm [shape: bf16[128,128], index: 0, kind: input, shape index: {}]   ;;  %s2493_s1 = inlined_call_operand.hbm [shape: bf16[128,128], index: 1, kind: input, shape index: {}]   ;;  %s2494_s2 = inlined_call_operand.hbm [shape: bf16[256,128], index: 2, kind: input, shape index: {}]   ;;  %s2495_s3 = inlined_call_operand.hbm [shape: bf16[384,128], index: 3, kind: input, shape index: {}]   ;;  %s2496_s4 = inlined_call_operand.hbm [shape: f32[5,128], index: 4, kind: input, shape index: {}]   ;;  %s2497_s5 = inlined_call_operand.hbm [shape: f32[128,128], index: 5, kind: output, shape index: {}]  }
   0x1   :  { %11 = vsyncpa [#allocation7], 0 }
   0x2   :  { %12 = vsyncpa [#allocation10], 0 }
   0x3   :  { %13 = vsyncpa [#allocation5], 0  ;;  %s2304_s18 = smov [#allocation6]   ;;  %s2305_s20 = smov [#allocation9]  }
   0x4   :  { %s31_s19 = sshll.u32 %s2304_s18, 4  ;;  %s55_s21 = sshll.u32 %s2305_s20, 4  ;;  %s32_s19 = int_to_ptr.vmem [resolvable:$true] %s31_s19  ;;  %s56_s21 = int_to_ptr.vmem [resolvable:$true] %s55_s21 }
   0x5   :  { %s2184_s22 = scalar_lea.vmem %s32_s19, 1024  ;;  %p2189_p1 = scmp.lt.s32.totalorder %s32_s19, %s32_s19 }
   0x6   :  { %p2185_p0 = scmp.ne.s32.totalorder %s32_s19, %s2184_s22  ;;  %p2190_p2 = scmp.lt.s32.totalorder %s2184_s22, %s2184_s22 }
   0x8   :  { %p2191_p3 = por %p2190_p2, %p2189_p1 }
   0xa   :  { %p2192_p4 = pnand %p2191_p3, %p2185_p0 }
   0xc   :  { %2195 = shalt.err (!%p2192_p4)
}
   0xd   :  { %s2306_s23 = smov 64   ;;  %s2307_s24 = smov 4  }
   0xe   :  { %37 = dma.hbm_to_vmem [thread:$0]  %s2493_s1, 1024, %s32_s19, [#allocation7], %s2306_s23, %s2306_s23, %s2307_s24  }
   0xf   :  { %s2204_s27 = scalar_lea.vmem %s56_s21, 3072  ;;  %p2209_p6 = scmp.lt.s32.totalorder %s56_s21, %s56_s21 }
  0x10   :  { %p2205_p5 = scmp.ne.s32.totalorder %s56_s21, %s2204_s27  ;;  %p2210_p7 = scmp.lt.s32.totalorder %s2204_s27, %s2204_s27 }
  0x12   :  { %p2211_p8 = por %p2210_p7, %p2209_p6 }
  0x14   :  { %p2212_p9 = pnand %p2211_p8, %p2205_p5 }
  0x16   :  { %2215 = shalt.err (!%p2212_p9)
}
  0x17   :  { %61 = dma.hbm_to_vmem [thread:$0]  %s2495_s3, 3072, %s56_s21, [#allocation10], %s2306_s23, %s2306_s23, %s2307_s24  }
  0x18   :  { %s2308_s30 = smov [#allocation3]   ;;  %s2309_s7 = smov [#allocation8]  }
  0x19   :  { %s19_s6 = sshll.u32 %s2308_s30, 4  ;;  %s43_s8 = sshll.u32 %s2309_s7, 4  ;;  %s20_s6 = int_to_ptr.vmem [resolvable:$true] %s19_s6  ;;  %s44_s8 = int_to_ptr.vmem [resolvable:$true] %s43_s8 }
  0x1a   :  { %s2224_s1 = scalar_lea.vmem %s20_s6, 1024  ;;  %p2229_p11 = scmp.lt.s32.totalorder %s20_s6, %s20_s6 }
  0x1b   :  { %p2225_p10 = scmp.ne.s32.totalorder %s20_s6, %s2224_s1  ;;  %p2230_p12 = scmp.lt.s32.totalorder %s2224_s1, %s2224_s1 }
  0x1d   :  { %p2231_p13 = por %p2230_p12, %p2229_p11 }
  0x1f   :  { %p2232_p0 = pnand %p2231_p13, %p2225_p10 }
  0x21   :  { %2235 = shalt.err (!%p2232_p0)
}
  0x22   :  { %25 = dma.hbm_to_vmem [thread:$0]  %s2492_s0, 1024, %s20_s6, [#allocation4], %s2306_s23, %s2306_s23, %s2307_s24  }
  0x23   :  { %s2244_s3 = scalar_lea.vmem %s44_s8, 2048  ;;  %p2249_p2 = scmp.lt.s32.totalorder %s44_s8, %s44_s8 }
  0x24   :  { %p2245_p1 = scmp.ne.s32.totalorder %s44_s8, %s2244_s3  ;;  %p2250_p3 = scmp.lt.s32.totalorder %s2244_s3, %s2244_s3 }
  0x26   :  { %p2251_p4 = por %p2250_p3, %p2249_p2 }
  0x28   :  { %p2252_p5 = pnand %p2251_p4, %p2245_p1 }
  0x2a   :  { %2255 = shalt.err (!%p2252_p5)
}
  0x2b   :  { %49 = dma.hbm_to_vmem [thread:$0]  %s2494_s2, 2048, %s44_s8, [#allocation7], %s2306_s23, %s2306_s23, %s2307_s24  }
  0x2c   :  { %s2310_s13 = smov [#allocation11]  }
  0x2d   :  { %s68_s14 = sshll.u32 %s2310_s13, 4  ;;  %s69_s14 = int_to_ptr.vmem [resolvable:$true] %s68_s14 }
  0x2e   :  { %s2264_s15 = scalar_lea.vmem %s69_s14, 128  ;;  %p2269_p7 = scmp.lt.s32.totalorder %s69_s14, %s69_s14 }
  0x2f   :  { %p2265_p6 = scmp.ne.s32.totalorder %s69_s14, %s2264_s15  ;;  %p2270_p8 = scmp.lt.s32.totalorder %s2264_s15, %s2264_s15 }
  0x31   :  { %p2271_p9 = por %p2270_p8, %p2269_p7 }
  0x33   :  { %p2272_p10 = pnand %p2271_p9, %p2265_p6 }
  0x35   :  { %2275 = shalt.err (!%p2272_p10)
}
  0x36   :  { %71 = dma.hbm_to_vmem [thread:$0]  %s2496_s4, 128, %s69_s14, [#allocation10]  }
  0x37   :  { %2296 = dma.done.wait [#allocation4], 1024  }
  0x38   :  { %2297 = vsyncadd [#allocation4], 4294966272 }
  0x39   :  { %2298 = dma.done.wait [#allocation7], 3072  }
  0x3a   :  { %2299 = vsyncadd [#allocation7], 4294964224 }
  0x3b   :  { %2300 = dma.done.wait [#allocation10], 3200  }
  0x3c   :  { %2301 = vsyncadd [#allocation10], 4294964096  ;;  %v2084_v0 = vld [vmem:[#allocation6 + $0x38] sm:$0xff]   ;;  %v2085_v1 = vld [vmem:[#allocation6 + $0x30] sm:$0xff]   ;;  %s2311_s2 = smov [#allocation12]  }
  0x3d   :  { %2010 = vmatprep.subr.bf16.mxu0 %v2084_v0  ;;  %v2086_v2 = vld [vmem:[#allocation6 + $0x28] sm:$0xff]   ;;  %v2087_v3 = vld [vmem:[#allocation6 + $0x20] sm:$0xff]   ;;  %v92_v8 = vld [vmem:[#allocation3 + $0x10] sm:$0xf]  ;;  %s1673_s4 = sshll.u32 %s2311_s2, 4  ;;  %s1674_s4 = int_to_ptr.vmem [resolvable:$true] %s1673_s4 }
  0x3e   :  { %2011 = vmatpush3.bf16.msra.mxu0 %v2084_v0  ;;  %v88_v4 = vld [vmem:[#allocation3] sm:$0xf]  ;;  %v89_v5 = vld [vmem:[#allocation3 + $0x4] sm:$0xf]  ;;  %v90_v6 = vld [vmem:[#allocation3 + $0x8] sm:$0xf]  ;;  %p2281_p12 = scmp.lt.s32.totalorder %s1674_s4, %s1674_s4 }
  0x3f   :  { %2012 = vmatprep.subr.bf16.mxu0 %v2085_v1  ;;  %104 = vst [vmem:[#allocation2] sm:$0xf] %v88_v4  ;;  %105 = vst [vmem:[#allocation2 + $0xc] sm:$0xf] %v89_v5  ;;  %v91_v7 = vld [vmem:[#allocation3 + $0xc] sm:$0xf] }
  0x40   :  { %106 = vst [vmem:[#allocation2 + $0x18] sm:$0xf] %v90_v6  ;;  %v93_v9 = vld [vmem:[#allocation3 + $0x14] sm:$0xf]  ;;  %v2088_v10 = vld [vmem:[#allocation6 + $0x18] sm:$0xff]   ;;  %v2090_v23 = vld [vmem:[#allocation6 + $0x8] sm:$0xff]  }
  0x41   :  { %107 = vst [vmem:[#allocation2 + $0x24] sm:$0xf] %v91_v7  ;;  %108 = vst [vmem:[#allocation2 + $0x30] sm:$0xf] %v92_v8  ;;  %v94_v11 = vld [vmem:[#allocation3 + $0x18] sm:$0xf] }
  0x42   :  { %2013 = vmatpush3.bf16.msra.mxu0 %v2085_v1  ;;  %109 = vst [vmem:[#allocation2 + $0x3c] sm:$0xf] %v93_v9  ;;  %v95_v12 = vld [vmem:[#allocation3 + $0x1c] sm:$0xf]  ;;  %v96_v13 = vld [vmem:[#allocation3 + $0x20] sm:$0xf] }
  0x43   :  { %2014 = vmatprep.subr.bf16.mxu0 %v2086_v2  ;;  %110 = vst [vmem:[#allocation2 + $0x48] sm:$0xf] %v94_v11  ;;  %111 = vst [vmem:[#allocation2 + $0x54] sm:$0xf] %v95_v12  ;;  %v97_v14 = vld [vmem:[#allocation3 + $0x24] sm:$0xf] }
  0x44   :  { %112 = vst [vmem:[#allocation2 + $0x60] sm:$0xf] %v96_v13  ;;  %v98_v15 = vld [vmem:[#allocation3 + $0x28] sm:$0xf]  ;;  %v99_v16 = vld [vmem:[#allocation3 + $0x2c] sm:$0xf] }
  0x45   :  { %113 = vst [vmem:[#allocation2 + $0x6c] sm:$0xf] %v97_v14  ;;  %114 = vst [vmem:[#allocation2 + $0x78] sm:$0xf] %v98_v15  ;;  %v100_v17 = vld [vmem:[#allocation3 + $0x30] sm:$0xf] }
  0x46   :  { %2015 = vmatpush3.bf16.msra.mxu0 %v2086_v2  ;;  %115 = vst [vmem:[#allocation2 + $0x84] sm:$0xf] %v99_v16  ;;  %v101_v18 = vld [vmem:[#allocation3 + $0x34] sm:$0xf]  ;;  %v102_v19 = vld [vmem:[#allocation3 + $0x38] sm:$0xf] }
  0x47   :  { %2016 = vmatprep.subr.bf16.mxu0 %v2087_v3  ;;  %116 = vst [vmem:[#allocation2 + $0x90] sm:$0xf] %v100_v17  ;;  %117 = vst [vmem:[#allocation2 + $0x9c] sm:$0xf] %v101_v18  ;;  %v103_v20 = vld [vmem:[#allocation3 + $0x3c] sm:$0xf] }
  0x48   :  { %118 = vst [vmem:[#allocation2 + $0xa8] sm:$0xf] %v102_v19  ;;  %v2089_v21 = vld [vmem:[#allocation6 + $0x10] sm:$0xff]   ;;  %119 = vst [vmem:[#allocation2 + $0xb4] sm:$0xf] %v103_v20  ;;  %v2091_v24 = vld [vmem:[#allocation6] sm:$0xff]  }
  0x49   :  { %v2092_v22 = vld [vmem:[#allocation2] ss:$12 sps:$4 sm:$0xff]   ;;  %v2093_v25 = vld [vmem:[#allocation2 + $0x18] ss:$12 sps:$4 sm:$0xff]   ;;  %v2094_v26 = vld [vmem:[#allocation2 + $0x30] ss:$12 sps:$4 sm:$0xff]  }
  0x4a   :  { %2017 = vmatpush3.bf16.msra.mxu0 %v2087_v3  ;;  %2026 = vmatprep.mubr.bf16.mxu0 %v2092_v22  ;;  %v2095_v27 = vld [vmem:[#allocation2 + $0x48] ss:$12 sps:$4 sm:$0xff]   ;;  %v2100_v32 = vld [vmem:[#allocation8 + $0x78] sm:$0xff]   ;;  %v2112_v44 = vld [vmem:[#allocation8 + $0x60] sm:$0xff]   ;;  %s2276_s17 = scalar_lea.vmem %s1674_s4, 2048 }
  0x4b   :  { %2018 = vmatprep.subr.bf16.mxu0 %v2088_v10  ;;  %v2101_v33 = vld [vmem:[#allocation9 + $0x78] sm:$0xff]   ;;  %1866 = vmatprep.subr.bf16.mxu1 %v2100_v32  ;;  %v2104_v36 = vld [vmem:[#allocation8 + $0x70] sm:$0xff]   ;;  %v2108_v40 = vld [vmem:[#allocation8 + $0x68] sm:$0xff]   ;;  %p2277_p11 = scmp.ne.s32.totalorder %s1674_s4, %s2276_s17  ;;  %p2282_p13 = scmp.lt.s32.totalorder %s2276_s17, %s2276_s17 }
  0x4c   :  { %v2096_v28 = vld [vmem:[#allocation2 + $0x60] ss:$12 sps:$4 sm:$0xff]   ;;  %v2102_v34 = vld [vmem:[#allocation8 + $0x38] sm:$0xff]   ;;  %v2105_v37 = vld [vmem:[#allocation9 + $0x70] sm:$0xff]  }
  0x4d   :  { %v2097_v29 = vld [vmem:[#allocation2 + $0x78] ss:$12 sps:$4 sm:$0xff]   ;;  %1867 = vmatpush3.bf16.msra.mxu1 %v2102_v34  ;;  %v2106_v38 = vld [vmem:[#allocation8 + $0x30] sm:$0xff]   ;;  %v2109_v41 = vld [vmem:[#allocation9 + $0x68] sm:$0xff]   ;;  %p2283_p0 = por %p2282_p13, %p2281_p12 }
  0x4e   :  { %2019 = vmatpush3.bf16.msra.mxu0 %v2088_v10  ;;  %v2098_v30 = vld [vmem:[#allocation2 + $0x90] ss:$12 sps:$4 sm:$0xff]   ;;  %1868 = vmatprep.subr.bf16.mxu1 %v2104_v36  ;;  %v2110_v42 = vld [vmem:[#allocation8 + $0x28] sm:$0xff]   ;;  %v2113_v45 = vld [vmem:[#allocation9 + $0x60] sm:$0xff]  }
  0x4f   :  { %2020 = vmatprep.subr.bf16.mxu0 %v2089_v21  ;;  %v2099_v31 = vld [vmem:[#allocation2 + $0xa8] ss:$12 sps:$4 sm:$0xff]   ;;  %v2103_v35 = vld [vmem:[#allocation9 + $0x38] sm:$0xff]   ;;  %v2114_v47 = vld [vmem:[#allocation8 + $0x20] sm:$0xff]   ;;  %p2284_p1 = pnand %p2283_p0, %p2277_p11 }
  0x50   :  { %v2107_v39 = vld [vmem:[#allocation9 + $0x30] sm:$0xff]   ;;  %v2111_v43 = vld [vmem:[#allocation9 + $0x28] sm:$0xff]   ;;  %v2115_v48 = vld [vmem:[#allocation9 + $0x20] sm:$0xff]  }
  0x51   :  { %1869 = vmatpush3.bf16.msra.mxu1 %v2106_v38  ;;  %v2116_v50 = vld [vmem:[#allocation8 + $0x58] sm:$0xff]   ;;  %v2120_v57 = vld [vmem:[#allocation8 + $0x50] sm:$0xff]   ;;  %v2124_v1 = vld [vmem:[#allocation8 + $0x48] sm:$0xff]  }
  0x52   :  { %2021 = vmatpush3.bf16.msra.mxu0 %v2089_v21  ;;  %1870 = vmatprep.subr.bf16.mxu1 %v2108_v40  ;;  %v2117_v51 = vld [vmem:[#allocation9 + $0x58] sm:$0xff]   ;;  %v2121_v58 = vld [vmem:[#allocation9 + $0x50] sm:$0xff]   ;;  %v2125_v2 = vld [vmem:[#allocation9 + $0x48] sm:$0xff]  }
  0x53   :  { %2022 = vmatprep.subr.bf16.mxu0 %v2090_v23  ;;  %v2118_v53 = vld [vmem:[#allocation8 + $0x18] sm:$0xff]   ;;  %v2122_v60 = vld [vmem:[#allocation8 + $0x10] sm:$0xff]   ;;  %v2126_v3 = vld [vmem:[#allocation8 + $0x8] sm:$0xff]  }
  0x54   :  { %v2119_v54 = vld [vmem:[#allocation9 + $0x18] sm:$0xff]   ;;  %v2123_v61 = vld [vmem:[#allocation9 + $0x10] sm:$0xff]   ;;  %v2127_v5 = vld [vmem:[#allocation9 + $0x8] sm:$0xff]  }
  0x55   :  { %1871 = vmatpush3.bf16.msra.mxu1 %v2110_v42  ;;  %v2128_v6 = vld [vmem:[#allocation8 + $0x40] sm:$0xff]  }
  0x56   :  { %2023 = vmatpush3.bf16.msra.mxu0 %v2090_v23  ;;  %1872 = vmatprep.subr.bf16.mxu1 %v2112_v44  ;;  %v2129_v7 = vld [vmem:[#allocation9 + $0x40] sm:$0xff]  }
  0x57   :  { %2024 = vmatprep.subr.bf16.mxu0 %v2091_v24  ;;  %v2130_v10 = vld [vmem:[#allocation8] sm:$0xff]  }
  0x58   :  { %v2131_v11 = vld [vmem:[#allocation9] sm:$0xff]  }
  0x59   :  { %1873 = vmatpush3.bf16.msra.mxu1 %v2114_v47 }
  0x5a   :  { %2025 = vmatpush3.bf16.msra.mxu0 %v2091_v24  ;;  %1874 = vmatprep.subr.bf16.mxu1 %v2116_v50 }
  0x5b   :  { %1930 = vmatprep.subr.bf16.mxu0 %v2101_v33 }
  0x5d   :  { %2027 = vmatmul.mubr.bf16.vlgmr.msra.gmra.mxu0 %v2093_v25  ;;  %1875 = vmatpush3.bf16.msra.mxu1 %v2118_v53 }
  0x5e   :  { %2030 = vmatprep.mubr.bf16.mxu0 %v2094_v26  ;;  %1931 = vmatpush3.bf16.msra.mxu0 %v2103_v35 }
  0x5f   :  { %1932 = vmatprep.subr.bf16.mxu0 %v2105_v37  ;;  %1876 = vmatprep.subr.bf16.mxu1 %v2120_v57 }
  0x61   :  { %1877 = vmatpush3.bf16.msra.mxu1 %v2122_v60 }
  0x62   :  { %1933 = vmatpush3.bf16.msra.mxu0 %v2107_v39  ;;  %1878 = vmatprep.subr.bf16.mxu1 %v2124_v1 }
  0x63   :  { %1934 = vmatprep.subr.bf16.mxu0 %v2109_v41 }
  0x65   :  { %2031 = vmatmul.mubr.bf16.gmra.mxu0 %v2095_v27  ;;  %1879 = vmatpush3.bf16.msra.mxu1 %v2126_v3 }
  0x66   :  { %2034 = vmatprep.mubr.bf16.mxu0 %v2096_v28  ;;  %1935 = vmatpush3.bf16.msra.mxu0 %v2111_v43 }
  0x67   :  { %1936 = vmatprep.subr.bf16.mxu0 %v2113_v45  ;;  %1880 = vmatprep.subr.bf16.mxu1 %v2128_v6 }
  0x69   :  { %1881 = vmatpush3.bf16.msra.mxu1 %v2130_v10 }
  0x6a   :  { %1937 = vmatpush3.bf16.msra.mxu0 %v2115_v48 }
  0x6b   :  { %1938 = vmatprep.subr.bf16.mxu0 %v2117_v51 }
  0x6d   :  { %2035 = vmatmul.mubr.bf16.gmra.mxu0 %v2097_v29 }
  0x6e   :  { %2038 = vmatprep.mubr.bf16.mxu0 %v2098_v30  ;;  %1939 = vmatpush3.bf16.msra.mxu0 %v2119_v54 }
  0x6f   :  { %1940 = vmatprep.subr.bf16.mxu0 %v2121_v58 }
  0x72   :  { %1941 = vmatpush3.bf16.msra.mxu0 %v2123_v61 }
  0x73   :  { %1942 = vmatprep.subr.bf16.mxu0 %v2125_v2 }
  0x75   :  { %2039 = vmatmul.mubr.bf16.gmra.mxu0 %v2099_v31 }
  0x76   :  { %1943 = vmatpush3.bf16.msra.mxu0 %v2127_v5 }
  0x77   :  { %1944 = vmatprep.subr.bf16.mxu0 %v2129_v7 }
  0x7a   :  { %1945 = vmatpush3.bf16.msra.mxu0 %v2131_v11 }
 0x11d   :  { %v2371_v46 = vpop.f32.mrf.mxu0 }
 0x11f   :  { %v2373_v49 = vpop.f32.mrf.mxu0 }
 0x121   :  { %v2375_v52 = vpop.f32.mrf.mxu0 }
 0x123   :  { %v285_v55 = vpop.f32.mrf.mxu0 }
 0x124   :  { %v345_v56 = vadd.f32 %v285_v55, %v2373_v49 }
 0x125   :  { %v2378_v59 = vpop.f32.mrf.mxu0 }
 0x126   :  { %v346_v62 = vadd.f32 %v2371_v46, %v345_v56 }
 0x127   :  { %v298_v63 = vpop.f32.mrf.mxu0 }
 0x128   :  { %v347_v0 = vadd.f32 %v2375_v52, %v346_v62 }
 0x129   :  { %v2033_v4 = vpop.f32.mrf.mxu0 }
 0x12a   :  { %v348_v8 = vadd.f32 %v347_v0, %v298_v63 }
 0x12b   :  { %v301_v9 = vpop.f32.mrf.mxu0 }
 0x12c   :  { %v349_v12 = vadd.f32 %v348_v8, %v301_v9 }
 0x12d   :  { %v2036_v13 = vpop.f32.mrf.mxu0 }
 0x12e   :  { %v350_v14 = vadd.f32 %v2378_v59, %v349_v12 }
 0x12f   :  { %v314_v15 = vpop.f32.mrf.mxu0 }
 0x130   :  { %v351_v16 = vadd.f32 %v2033_v4, %v350_v14 }
 0x131   :  { %v2037_v17 = vpop.f32.mrf.mxu0 }
 0x132   :  { %v352_v18 = vadd.f32 %v351_v16, %v314_v15 }
 0x133   :  { %v317_v19 = vpop.f32.mrf.mxu0 }
 0x134   :  { %v353_v20 = vadd.f32 %v352_v18, %v317_v19 }
 0x135   :  { %v2040_v21 = vpop.f32.mrf.mxu0 }
 0x136   :  { %v354_v22 = vadd.f32 %v2036_v13, %v353_v20 }
 0x137   :  { %v330_v23 = vpop.f32.mrf.mxu0 }
 0x138   :  { %v355_v24 = vadd.f32 %v2037_v17, %v354_v22 }
 0x139   :  { %v2041_v25 = vpop.f32.mrf.mxu0 }
 0x13a   :  { %v356_v26 = vadd.f32 %v355_v24, %v330_v23 }
 0x13b   :  { %v333_v27 = vpop.f32.mrf.mxu0 }
 0x13c   :  { %v357_v28 = vadd.f32 %v356_v26, %v333_v27 }
 0x13e   :  { %v358_v29 = vadd.f32 %v2040_v21, %v357_v28 }
 0x140   :  { %v359_v30 = vadd.f32 %v2041_v25, %v358_v29 }
 0x142   :  { %v360_v31 = vrot.slane %v359_v30, 4 }
 0x144   :  { %v361_v32 = vadd.f32 %v360_v31, %v359_v30 }
 0x146   :  { %v362_v33 = vrot.slane %v361_v32, 2 }
 0x148   :  { %v363_v34 = vadd.f32 %v362_v33, %v361_v32 }
 0x14a   :  { %v364_v35 = vrot.slane %v363_v34, 1 }
 0x14c   :  { %v365_v36 = vadd.f32 %v364_v35, %v363_v34 }
 0x14e   :  { %v367_v37 = vmul.f32 0.0078125, %v365_v36 }
 0x150   :  { %v2384_v38 = vsub.f32 %v2373_v49, %v367_v37  ;;  %v2386_v39 = vsub.f32 %v285_v55, %v367_v37  ;;  %v2389_v40 = vsub.f32 %v2371_v46, %v367_v37  ;;  %v371_v43 = vsub.f32 %v2375_v52, %v367_v37 }
 0x151   :  { %v372_v44 = vsub.f32 %v298_v63, %v367_v37  ;;  %v373_v48 = vsub.f32 %v301_v9, %v367_v37  ;;  %v374_v51 = vsub.f32 %v2378_v59, %v367_v37  ;;  %v375_v54 = vsub.f32 %v2033_v4, %v367_v37 }
 0x152   :  { %v384_v41 = vmul.f32 %v2384_v38, %v2384_v38  ;;  %v385_v42 = vmul.f32 %v2386_v39, %v2386_v39  ;;  %v386_v45 = vmul.f32 %v2389_v40, %v2389_v40  ;;  %v387_v49 = vmul.f32 %v371_v43, %v371_v43 }
 0x153   :  { %v388_v46 = vmul.f32 %v372_v44, %v372_v44  ;;  %v389_v55 = vmul.f32 %v373_v48, %v373_v48  ;;  %v376_v57 = vsub.f32 %v314_v15, %v367_v37  ;;  %v390_v58 = vmul.f32 %v374_v51, %v374_v51 }
 0x154   :  { %v400_v47 = vadd.f32 %v385_v42, %v384_v41  ;;  %v377_v61 = vsub.f32 %v317_v19, %v367_v37  ;;  %v391_v52 = vmul.f32 %v375_v54, %v375_v54  ;;  %v378_v63 = vsub.f32 %v2036_v13, %v367_v37 }
 0x155   :  { %v392_v0 = vmul.f32 %v376_v57, %v376_v57  ;;  %v379_v2 = vsub.f32 %v2037_v17, %v367_v37  ;;  %v380_v6 = vsub.f32 %v330_v23, %v367_v37  ;;  %v381_v8 = vsub.f32 %v333_v27, %v367_v37 }
 0x156   :  { %v401_v50 = vadd.f32 %v400_v47, %v386_v45  ;;  %v393_v3 = vmul.f32 %v377_v61, %v377_v61  ;;  %v394_v7 = vmul.f32 %v378_v63, %v378_v63  ;;  %v382_v10 = vsub.f32 %v2040_v21, %v367_v37  ;;  %v2411_v45 = vld [vmem:[#allocation11 + $0x1] ss:$0 sm:$0xff] }
 0x157   :  { %v395_v9 = vmul.f32 %v379_v2, %v379_v2  ;;  %v396_v11 = vmul.f32 %v380_v6, %v380_v6  ;;  %v383_v14 = vsub.f32 %v2041_v25, %v367_v37  ;;  %v397_v15 = vmul.f32 %v381_v8, %v381_v8  ;;  %v422_v25 = vld [vmem:[#allocation11] sm:$0x1] }
 0x158   :  { %v402_v53 = vadd.f32 %v401_v50, %v387_v49  ;;  %v398_v18 = vmul.f32 %v382_v10, %v382_v10  ;;  %v427_v21 = vlaneseq }
 0x159   :  { %v399_v13 = vmul.f32 %v383_v14, %v383_v14 }
 0x15a   :  { %v403_v56 = vadd.f32 %v402_v53, %v388_v46  ;;  %v2399_v31 = vshrl.u32 %v427_v21, 7 }
 0x15c   :  { %v404_v60 = vadd.f32 %v403_v56, %v389_v55  ;;  %v429_v32 = vsub.s32 0, %v2399_v31 }
 0x15e   :  { %v405_v62 = vadd.f32 %v404_v60, %v390_v58 }
 0x160   :  { %v406_v1 = vadd.f32 %v405_v62, %v391_v52 }
 0x162   :  { %v407_v5 = vadd.f32 %v406_v1, %v392_v0 }
 0x164   :  { %v408_v59 = vadd.f32 %v407_v5, %v393_v3 }
 0x166   :  { %v409_v4 = vadd.f32 %v408_v59, %v394_v7 }
 0x168   :  { %v410_v12 = vadd.f32 %v409_v4, %v395_v9 }
 0x16a   :  { %v411_v16 = vadd.f32 %v410_v12, %v396_v11 }
 0x16c   :  { %v412_v19 = vadd.f32 %v411_v16, %v397_v15 }
 0x16e   :  { %v413_v20 = vadd.f32 %v412_v19, %v398_v18 }
 0x170   :  { %v414_v22 = vadd.f32 %v413_v20, %v399_v13 }
 0x172   :  { %v415_v17 = vrot.slane %v414_v22, 4 }
 0x174   :  { %v416_v24 = vadd.f32 %v415_v17, %v414_v22 }
 0x176   :  { %v417_v26 = vrot.slane %v416_v24, 2 }
 0x178   :  { %v418_v23 = vadd.f32 %v417_v26, %v416_v24 }
 0x17a   :  { %v419_v28 = vrot.slane %v418_v23, 1 }
 0x17c   :  { %v420_v29 = vadd.f32 %v419_v28, %v418_v23 }
 0x17e   :  { %v421_v27 = vmul.f32 0.0078125, %v420_v29 }
 0x180   :  { %v424_v30 = vadd.f32 1e-05, %v421_v27 }
 0x182   :  { %2172 = vrsqrt.f32 %v424_v30 }
 0x18f   :  { %v2173_v33 = vpop.eup %2172 }
 0x190   :  { %v426_v34 = vmul.f32 %v2173_v33, %v422_v25 }
 0x192   :  { %v430_v35 = vrot.slane %v426_v34, %v429_v32 }
 0x194   :  { %v2405_v36 = vmul.f32 %v430_v35, %v2384_v38  ;;  %v2408_v37 = vmul.f32 %v430_v35, %v2386_v39  ;;  %v433_v41 = vmul.f32 %v430_v35, %v2389_v40  ;;  %v434_v42 = vmul.f32 %v430_v35, %v371_v43 }
 0x195   :  { %v435_v47 = vmul.f32 %v430_v35, %v372_v44  ;;  %v436_v49 = vmul.f32 %v430_v35, %v373_v48  ;;  %v437_v50 = vmul.f32 %v430_v35, %v374_v51  ;;  %v438_v46 = vmul.f32 %v430_v35, %v375_v54 }
 0x196   :  { %v439_v53 = vmul.f32 %v430_v35, %v376_v57  ;;  %v440_v55 = vmul.f32 %v430_v35, %v377_v61  ;;  %v441_v56 = vmul.f32 %v430_v35, %v378_v63  ;;  %v442_v58 = vmul.f32 %v430_v35, %v379_v2 }
 0x197   :  { %v443_v60 = vmul.f32 %v430_v35, %v380_v6  ;;  %v444_v52 = vmul.f32 %v430_v35, %v381_v8  ;;  %v445_v38 = vmul.f32 %v430_v35, %v382_v10  ;;  %v446_v62 = vmul.f32 %v430_v35, %v383_v14 }
 0x198   :  { %v453_v39 = vadd.f32 %v2411_v45, %v433_v41  ;;  %v454_v0 = vadd.f32 %v2411_v45, %v434_v42  ;;  %v455_v40 = vadd.f32 %v2411_v45, %v435_v47  ;;  %v456_v43 = vadd.f32 %v2411_v45, %v436_v49  ;;  %v2132_v49 = vld [vmem:[#allocation2] ss:$12 sps:$4 sm:$0xff]  }
 0x199   :  { %v457_v44 = vadd.f32 %v2411_v45, %v437_v50  ;;  %v458_v48 = vadd.f32 %v2411_v45, %v438_v46  ;;  %v459_v51 = vadd.f32 %v2411_v45, %v439_v53  ;;  %v460_v54 = vadd.f32 %v2411_v45, %v440_v55  ;;  %v2140_v46 = vld [vmem:[#allocation2 + $0x30] ss:$12 sps:$4 sm:$0xff]   ;;  %v2143_v55 = vld [vmem:[#allocation2 + $0x48] ss:$12 sps:$4 sm:$0xff]  }
 0x19a   :  { %v461_v57 = vadd.f32 %v2411_v45, %v441_v56  ;;  %v462_v61 = vadd.f32 %v2411_v45, %v442_v58  ;;  %v463_v63 = vadd.f32 %v2411_v45, %v443_v60  ;;  %v464_v1 = vadd.f32 %v2411_v45, %v444_v52  ;;  %v2146_v58 = vld [vmem:[#allocation2 + $0x60] ss:$12 sps:$4 sm:$0xff]   ;;  %v2149_v52 = vld [vmem:[#allocation2 + $0x78] ss:$12 sps:$4 sm:$0xff]  }
 0x19b   :  { %v465_v2 = vadd.f32 %v2411_v45, %v445_v38  ;;  %v466_v3 = vadd.f32 %v2411_v45, %v446_v62  ;;  %v469_v5 = vmax.f32 %v453_v39, 0.0  ;;  %v470_v6 = vmax.f32 %v454_v0, 0.0  ;;  %v2152_v62 = vld [vmem:[#allocation2 + $0x90] ss:$12 sps:$4 sm:$0xff]   ;;  %v2155_v0 = vld [vmem:[#allocation2 + $0xa8] ss:$12 sps:$4 sm:$0xff]  }
 0x19c   :  { %v471_v7 = vmax.f32 %v455_v40, 0.0  ;;  %v472_v59 = vmax.f32 %v456_v43, 0.0  ;;  %v473_v8 = vmax.f32 %v457_v44, 0.0  ;;  %v474_v9 = vmax.f32 %v458_v48, 0.0 }
 0x19d   :  { %v475_v4 = vmax.f32 %v459_v51, 0.0  ;;  %v476_v10 = vmax.f32 %v460_v54, 0.0  ;;  %v477_v11 = vmax.f32 %v461_v57, 0.0  ;;  %v478_v12 = vmax.f32 %v462_v61, 0.0 }
 0x19e   :  { %v479_v14 = vmax.f32 %v463_v63, 0.0  ;;  %v480_v15 = vmax.f32 %v464_v1, 0.0  ;;  %v481_v16 = vmax.f32 %v465_v2, 0.0  ;;  %v482_v18 = vmax.f32 %v466_v3, 0.0  ;;  %v2156_v1 = vld [vmem:[#allocation9 + $0xb8] sm:$0xff]  }
 0x19f   :  { %v1820_v19 = vpack.c.bf16 %v469_v5, %v469_v5  ;;  %v1821_v13 = vpack.c.bf16 %v470_v6, %v470_v6  ;;  %v1822_v20 = vpack.c.bf16 %v471_v7, %v471_v7  ;;  %v1823_v22 = vpack.c.bf16 %v472_v59, %v472_v59  ;;  %2042 = vmatprep.subr.bf16.mxu1 %v2156_v1  ;;  %v2157_v5 = vld [vmem:[#allocation9 + $0xb0] sm:$0xff]   ;;  %v2158_v59 = vld [vmem:[#allocation9 + $0xa8] sm:$0xff]  }
 0x1a0   :  { %v1824_v17 = vpack.c.bf16 %v473_v8, %v473_v8  ;;  %v1825_v24 = vpack.c.bf16 %v474_v9, %v474_v9  ;;  %v1826_v26 = vpack.c.bf16 %v475_v4, %v475_v4  ;;  %v1827_v23 = vpack.c.bf16 %v476_v10, %v476_v10  ;;  %v2159_v4 = vld [vmem:[#allocation9 + $0xa0] sm:$0xff]  }
 0x1a1   :  { %v1828_v28 = vpack.c.bf16 %v477_v11, %v477_v11  ;;  %v1829_v29 = vpack.c.bf16 %v478_v12, %v478_v12  ;;  %v1830_v27 = vpack.c.bf16 %v479_v14, %v479_v14  ;;  %v1831_v30 = vpack.c.bf16 %v480_v15, %v480_v15  ;;  %550 = vst [vmem:[#allocation2 + $0x28] sm:$0xf] %v1821_v13  ;;  %v2160_v14 = vld [vmem:[#allocation9 + $0x98] sm:$0xff]  }
 0x1a2   :  { %551 = vst [vmem:[#allocation2 + $0x34] sm:$0xf] %v1822_v20  ;;  %552 = vst [vmem:[#allocation2 + $0x40] sm:$0xf] %v1823_v22  ;;  %v1832_v21 = vpack.c.bf16 %v481_v16, %v481_v16  ;;  %v1833_v25 = vpack.c.bf16 %v482_v18, %v482_v18  ;;  %v451_v33 = vadd.f32 %v2411_v45, %v2405_v36  ;;  %v2161_v22 = vld [vmem:[#allocation9 + $0x90] sm:$0xff]  }
 0x1a3   :  { %549 = vst [vmem:[#allocation2 + $0x1c] sm:$0xf] %v1820_v19  ;;  %553 = vst [vmem:[#allocation2 + $0x4c] sm:$0xf] %v1824_v17  ;;  %v452_v34 = vadd.f32 %v2411_v45, %v2408_v37  ;;  %v2137_v37 = vld [vmem:[#allocation2 + $0x18] ss:$12 sps:$4 sm:$0xff]  }
 0x1a4   :  { %554 = vst [vmem:[#allocation2 + $0x58] sm:$0xf] %v1825_v24  ;;  %555 = vst [vmem:[#allocation2 + $0x64] sm:$0xf] %v1826_v26  ;;  %v467_v35 = vmax.f32 %v451_v33, 0.0 }
 0x1a5   :  { %556 = vst [vmem:[#allocation2 + $0x70] sm:$0xf] %v1827_v23  ;;  %557 = vst [vmem:[#allocation2 + $0x7c] sm:$0xf] %v1828_v28  ;;  %v468_v41 = vmax.f32 %v452_v34, 0.0 }
 0x1a6   :  { %558 = vst [vmem:[#allocation2 + $0x88] sm:$0xf] %v1829_v29  ;;  %559 = vst [vmem:[#allocation2 + $0x94] sm:$0xf] %v1830_v27  ;;  %v1818_v42 = vpack.c.bf16 %v467_v35, %v467_v35  ;;  %v2162_v27 = vld [vmem:[#allocation9 + $0x88] sm:$0xff]  }
 0x1a7   :  { %560 = vst [vmem:[#allocation2 + $0xa0] sm:$0xf] %v1831_v30  ;;  %561 = vst [vmem:[#allocation2 + $0xac] sm:$0xf] %v1832_v21  ;;  %v1819_v47 = vpack.c.bf16 %v468_v41, %v468_v41  ;;  %v2163_v30 = vld [vmem:[#allocation9 + $0x80] sm:$0xff]  }
 0x1a8   :  { %562 = vst [vmem:[#allocation2 + $0xb8] sm:$0xf] %v1833_v25  ;;  %547 = vst [vmem:[#allocation2 + $0x4] sm:$0xf] %v1818_v42 }
 0x1a9   :  { %548 = vst [vmem:[#allocation2 + $0x10] sm:$0xf] %v1819_v47  ;;  %v2138_v45 = vld [vmem:[#allocation2 + $0x34] ss:$12 sps:$4 sm:$0xff]  }
 0x1aa   :  { %v2135_v36 = vld [vmem:[#allocation2 + $0x1c] ss:$12 sps:$4 sm:$0xff]  }
 0x1ab   :  { %v2141_v53 = vld [vmem:[#allocation2 + $0x4c] ss:$12 sps:$4 sm:$0xff]  }
 0x1ac   :  { %v2144_v56 = vld [vmem:[#allocation2 + $0x64] ss:$12 sps:$4 sm:$0xff]  }
 0x1ad   :  { %v2147_v60 = vld [vmem:[#allocation2 + $0x7c] ss:$12 sps:$4 sm:$0xff]  }
 0x1ae   :  { %v2150_v38 = vld [vmem:[#allocation2 + $0x94] ss:$12 sps:$4 sm:$0xff]  }
 0x1af   :  { %v2153_v39 = vld [vmem:[#allocation2 + $0xac] ss:$12 sps:$4 sm:$0xff]  }
 0x1b0   :  { %v2134_v50 = vld [vmem:[#allocation2 + $0x4] ss:$12 sps:$4 sm:$0xff]  }
 0x1b1   :  { %819 = vmatprep.mubr.bf16.mxu1 %v2134_v50  ;;  %1490 = vmatprep.mubr.bf16.mxu0 %v2134_v50 }
 0x1b2   :  { %820 = vmatmul.mubr.bf16.vlgmr.msra.gmra.mxu1 %v2132_v49  ;;  %1491 = vmatmul.mubr.bf16.vlgmr.msra.gmra.mxu0 %v2132_v49 }
 0x1b3   :  { %827 = vmatprep.mubr.bf16.mxu1 %v2135_v36  ;;  %1498 = vmatprep.mubr.bf16.mxu0 %v2135_v36 }
 0x1b4   :  { %2043 = vmatpush3.bf16.msra.mxu1 %v2156_v1 }
 0x1b5   :  { %2044 = vmatprep.subr.bf16.mxu1 %v2157_v5 }
 0x1b8   :  { %2045 = vmatpush3.bf16.msra.mxu1 %v2157_v5 }
 0x1b9   :  { %2046 = vmatprep.subr.bf16.mxu1 %v2158_v59 }
 0x1ba   :  { %828 = vmatmul.mubr.bf16.gmra.mxu1 %v2137_v37  ;;  %1499 = vmatmul.mubr.bf16.gmra.mxu0 %v2137_v37 }
 0x1bb   :  { %835 = vmatprep.mubr.bf16.mxu1 %v2138_v45  ;;  %1506 = vmatprep.mubr.bf16.mxu0 %v2138_v45 }
 0x1bc   :  { %2047 = vmatpush3.bf16.msra.mxu1 %v2158_v59 }
 0x1bd   :  { %2048 = vmatprep.subr.bf16.mxu1 %v2159_v4 }
 0x1c0   :  { %2049 = vmatpush3.bf16.msra.mxu1 %v2159_v4 }
 0x1c1   :  { %2050 = vmatprep.subr.bf16.mxu1 %v2160_v14 }
 0x1c2   :  { %836 = vmatmul.mubr.bf16.gmra.mxu1 %v2140_v46  ;;  %1507 = vmatmul.mubr.bf16.gmra.mxu0 %v2140_v46 }
 0x1c3   :  { %843 = vmatprep.mubr.bf16.mxu1 %v2141_v53  ;;  %1514 = vmatprep.mubr.bf16.mxu0 %v2141_v53 }
 0x1c4   :  { %2051 = vmatpush3.bf16.msra.mxu1 %v2160_v14 }
 0x1c5   :  { %2052 = vmatprep.subr.bf16.mxu1 %v2161_v22 }
 0x1c8   :  { %2053 = vmatpush3.bf16.msra.mxu1 %v2161_v22 }
 0x1c9   :  { %2054 = vmatprep.subr.bf16.mxu1 %v2162_v27 }
 0x1ca   :  { %844 = vmatmul.mubr.bf16.gmra.mxu1 %v2143_v55  ;;  %1515 = vmatmul.mubr.bf16.gmra.mxu0 %v2143_v55 }
 0x1cb   :  { %851 = vmatprep.mubr.bf16.mxu1 %v2144_v56  ;;  %1522 = vmatprep.mubr.bf16.mxu0 %v2144_v56 }
 0x1cc   :  { %2055 = vmatpush3.bf16.msra.mxu1 %v2162_v27 }
 0x1cd   :  { %2056 = vmatprep.subr.bf16.mxu1 %v2163_v30 }
 0x1d0   :  { %2057 = vmatpush3.bf16.msra.mxu1 %v2163_v30 }
 0x1d2   :  { %852 = vmatmul.mubr.bf16.gmra.mxu1 %v2146_v58  ;;  %1523 = vmatmul.mubr.bf16.gmra.mxu0 %v2146_v58 }
 0x1d3   :  { %859 = vmatprep.mubr.bf16.mxu1 %v2147_v60  ;;  %1530 = vmatprep.mubr.bf16.mxu0 %v2147_v60 }
 0x1da   :  { %860 = vmatmul.mubr.bf16.gmra.mxu1 %v2149_v52  ;;  %1531 = vmatmul.mubr.bf16.gmra.mxu0 %v2149_v52 }
 0x1db   :  { %867 = vmatprep.mubr.bf16.mxu1 %v2150_v38  ;;  %1538 = vmatprep.mubr.bf16.mxu0 %v2150_v38 }
 0x1e2   :  { %868 = vmatmul.mubr.bf16.gmra.mxu1 %v2152_v62  ;;  %1539 = vmatmul.mubr.bf16.gmra.mxu0 %v2152_v62 }
 0x1e3   :  { %875 = vmatprep.mubr.bf16.mxu1 %v2153_v39  ;;  %1546 = vmatprep.mubr.bf16.mxu0 %v2153_v39 }
 0x1ea   :  { %876 = vmatmul.mubr.bf16.gmra.mxu1 %v2155_v0  ;;  %1547 = vmatmul.mubr.bf16.gmra.mxu0 %v2155_v0 }
 0x272   :  { %v1882_v40 = vpop.f32.mrf.mxu1 }
 0x274   :  { %v1883_v43 = vpop.f32.mrf.mxu1 }
 0x275   :  { %v1884_v16 = vadd.f32 %v1883_v43, %v1882_v40 }
 0x276   :  { %v1885_v44 = vpop.f32.mrf.mxu1 }
 0x278   :  { %v1886_v48 = vpop.f32.mrf.mxu1 }
 0x279   :  { %v2431_v12 = vadd.f32 %v1886_v48, %v1885_v44 }
 0x27a   :  { %v1888_v51 = vpop.f32.mrf.mxu1 }
 0x27b   :  { %v884_v13 = vadd.f32 %v2431_v12, %v1884_v16 }
 0x27c   :  { %v1889_v54 = vpop.f32.mrf.mxu1 }
 0x27d   :  { %v2433_v18 = vadd.f32 %v1889_v54, %v1888_v51 }
 0x27e   :  { %v1891_v57 = vpop.f32.mrf.mxu1 }
 0x27f   :  { %v885_v24 = vadd.f32 %v2433_v18, %v884_v13 }
 0x280   :  { %v1892_v61 = vpop.f32.mrf.mxu1 }
 0x281   :  { %v1893_v20 = vadd.f32 %v1892_v61, %v1891_v57 }
 0x282   :  { %v1894_v63 = vpop.f32.mrf.mxu1 }
 0x283   :  { %v886_v28 = vadd.f32 %v1893_v20, %v885_v24 }
 0x284   :  { %v1895_v2 = vpop.f32.mrf.mxu1 }
 0x285   :  { %v1896_v26 = vadd.f32 %v1895_v2, %v1894_v63 }
 0x286   :  { %v1897_v3 = vpop.f32.mrf.mxu1 }
 0x287   :  { %v887_v25 = vadd.f32 %v1896_v26, %v886_v28 }
 0x288   :  { %v1898_v6 = vpop.f32.mrf.mxu1 }
 0x289   :  { %v1899_v29 = vadd.f32 %v1898_v6, %v1897_v3 }
 0x28a   :  { %v1900_v7 = vpop.f32.mrf.mxu1 }
 0x28b   :  { %v888_v35 = vadd.f32 %v1899_v29, %v887_v25 }
 0x28c   :  { %v1901_v8 = vpop.f32.mrf.mxu1 }
 0x28d   :  { %v1902_v33 = vadd.f32 %v1901_v8, %v1900_v7 }
 0x28e   :  { %v1903_v9 = vpop.f32.mrf.mxu1 }
 0x28f   :  { %v889_v47 = vadd.f32 %v1902_v33, %v888_v35 }
 0x290   :  { %v1904_v10 = vpop.f32.mrf.mxu1 }
 0x291   :  { %v1905_v41 = vadd.f32 %v1904_v10, %v1903_v9 }
 0x292   :  { %v1906_v11 = vpop.f32.mrf.mxu1 }
 0x293   :  { %v890_v36 = vadd.f32 %v1905_v41, %v889_v47 }
 0x294   :  { %v1907_v15 = vpop.f32.mrf.mxu1 }
 0x295   :  { %v1908_v49 = vadd.f32 %v1907_v15, %v1906_v11 }
 0x296   :  { %v1909_v19 = vpop.f32.mrf.mxu1 }
 0x297   :  { %v891_v46 = vadd.f32 %v1908_v49, %v890_v36 }
 0x298   :  { %v1910_v17 = vpop.f32.mrf.mxu1 }
 0x299   :  { %v1911_v37 = vadd.f32 %v1910_v17, %v1909_v19 }
 0x29a   :  { %v1912_v23 = vpop.f32.mrf.mxu1 }
 0x29b   :  { %v892_v56 = vadd.f32 %v1911_v37, %v891_v46 }
 0x29c   :  { %v1913_v21 = vpop.f32.mrf.mxu1 }
 0x29d   :  { %v1914_v53 = vadd.f32 %v1913_v21, %v1912_v23 }
 0x29e   :  { %v1915_v34 = vpop.f32.mrf.mxu1 }
 0x29f   :  { %v893_v52 = vadd.f32 %v1914_v53, %v892_v56 }
 0x2a0   :  { %v1916_v42 = vpop.f32.mrf.mxu1 }
 0x2a1   :  { %v1917_v58 = vadd.f32 %v1916_v42, %v1915_v34 }
 0x2a2   :  { %v1918_v50 = vpop.f32.mrf.mxu1 }
 0x2a3   :  { %v894_v39 = vadd.f32 %v1917_v58, %v893_v52 }
 0x2a4   :  { %v1919_v45 = vpop.f32.mrf.mxu1 }
 0x2a5   :  { %v1920_v38 = vadd.f32 %v1919_v45, %v1918_v50 }
 0x2a6   :  { %v1921_v55 = vpop.f32.mrf.mxu1 }
 0x2a7   :  { %v895_v43 = vadd.f32 %v1920_v38, %v894_v39 }
 0x2a8   :  { %v1922_v60 = vpop.f32.mrf.mxu1 }
 0x2a9   :  { %v1923_v0 = vadd.f32 %v1922_v60, %v1921_v55 }
 0x2aa   :  { %v1924_v62 = vpop.f32.mrf.mxu1 }
 0x2ab   :  { %v896_v51 = vadd.f32 %v1923_v0, %v895_v43 }
 0x2ac   :  { %v1925_v40 = vpop.f32.mrf.mxu1 }
 0x2ad   :  { %v1926_v44 = vadd.f32 %v1925_v40, %v1924_v62 }
 0x2ae   :  { %v1927_v48 = vpop.f32.mrf.mxu1 }
 0x2af   :  { %v897_v57 = vadd.f32 %v1926_v44, %v896_v51 }
 0x2b0   :  { %v1928_v54 = vpop.f32.mrf.mxu1 }
 0x2b1   :  { %v1929_v61 = vadd.f32 %v1928_v54, %v1927_v48 }
 0x2b3   :  { %v898_v63 = vadd.f32 %v1929_v61, %v897_v57 }
 0x2b5   :  { %v899_v1 = vrot.slane %v898_v63, 4 }
 0x2b7   :  { %v900_v2 = vadd.f32 %v899_v1, %v898_v63 }
 0x2b9   :  { %v901_v3 = vrot.slane %v900_v2, 2 }
 0x2bb   :  { %v902_v5 = vadd.f32 %v901_v3, %v900_v2 }
 0x2bd   :  { %v903_v6 = vrot.slane %v902_v5, 1 }
 0x2bf   :  { %v904_v7 = vadd.f32 %v903_v6, %v902_v5 }
 0x2c1   :  { %v905_v59 = vmul.f32 0.0078125, %v904_v7 }
 0x2c3   :  { %v906_v8 = vsub.f32 %v1884_v16, %v905_v59  ;;  %v907_v9 = vsub.f32 %v2431_v12, %v905_v59  ;;  %v908_v4 = vsub.f32 %v2433_v18, %v905_v59  ;;  %v909_v14 = vsub.f32 %v1893_v20, %v905_v59 }
 0x2c4   :  { %v910_v15 = vsub.f32 %v1896_v26, %v905_v59  ;;  %v911_v22 = vsub.f32 %v1899_v29, %v905_v59  ;;  %v912_v23 = vsub.f32 %v1902_v33, %v905_v59  ;;  %v913_v30 = vsub.f32 %v1905_v41, %v905_v59 }
 0x2c5   :  { %v922_v10 = vmul.f32 %v906_v8, %v906_v8  ;;  %v923_v11 = vmul.f32 %v907_v9, %v907_v9  ;;  %v924_v19 = vmul.f32 %v908_v4, %v908_v4  ;;  %v925_v17 = vmul.f32 %v909_v14, %v909_v14 }
 0x2c6   :  { %v926_v28 = vmul.f32 %v910_v15, %v910_v15  ;;  %v927_v21 = vmul.f32 %v911_v22, %v911_v22  ;;  %v914_v16 = vsub.f32 %v1908_v49, %v905_v59  ;;  %v928_v34 = vmul.f32 %v912_v23, %v912_v23 }
 0x2c7   :  { %v938_v13 = vadd.f32 %v923_v11, %v922_v10  ;;  %v915_v35 = vsub.f32 %v1911_v37, %v905_v59  ;;  %v929_v18 = vmul.f32 %v913_v30, %v913_v30  ;;  %v916_v47 = vsub.f32 %v1914_v53, %v905_v59  ;;  %v2445_v11 = vld [vmem:[#allocation11 + $0x3] ss:$0 sm:$0xff] }
 0x2c8   :  { %v930_v20 = vmul.f32 %v914_v16, %v914_v16  ;;  %v917_v50 = vsub.f32 %v1917_v58, %v905_v59  ;;  %v918_v45 = vsub.f32 %v1920_v38, %v905_v59  ;;  %v919_v55 = vsub.f32 %v1923_v0, %v905_v59 }
 0x2c9   :  { %v939_v24 = vadd.f32 %v938_v13, %v924_v19  ;;  %v931_v36 = vmul.f32 %v915_v35, %v915_v35  ;;  %v932_v46 = vmul.f32 %v916_v47, %v916_v47  ;;  %v920_v60 = vsub.f32 %v1926_v44, %v905_v59  ;;  %v960_v44 = vld [vmem:[#allocation11 + $0x2] sm:$0x1] }
 0x2ca   :  { %v933_v56 = vmul.f32 %v917_v50, %v917_v50  ;;  %v934_v52 = vmul.f32 %v918_v45, %v918_v45  ;;  %v921_v62 = vsub.f32 %v1929_v61, %v905_v59  ;;  %v935_v39 = vmul.f32 %v919_v55, %v919_v55 }
 0x2cb   :  { %v940_v27 = vadd.f32 %v939_v24, %v925_v17  ;;  %v936_v40 = vmul.f32 %v920_v60, %v920_v60 }
 0x2cc   :  { %v937_v53 = vmul.f32 %v921_v62, %v921_v62 }
 0x2cd   :  { %v941_v25 = vadd.f32 %v940_v27, %v926_v28 }
 0x2cf   :  { %v942_v12 = vadd.f32 %v941_v25, %v927_v21 }
 0x2d1   :  { %v943_v42 = vadd.f32 %v942_v12, %v928_v34 }
 0x2d3   :  { %v944_v26 = vadd.f32 %v943_v42, %v929_v18 }
 0x2d5   :  { %v945_v29 = vadd.f32 %v944_v26, %v930_v20 }
 0x2d7   :  { %v946_v33 = vadd.f32 %v945_v29, %v931_v36 }
 0x2d9   :  { %v947_v41 = vadd.f32 %v946_v33, %v932_v46 }
 0x2db   :  { %v948_v49 = vadd.f32 %v947_v41, %v933_v56 }
 0x2dd   :  { %v949_v37 = vadd.f32 %v948_v49, %v934_v52 }
 0x2df   :  { %v950_v43 = vadd.f32 %v949_v37, %v935_v39 }
 0x2e1   :  { %v951_v48 = vadd.f32 %v950_v43, %v936_v40 }
 0x2e3   :  { %v952_v51 = vadd.f32 %v951_v48, %v937_v53 }
 0x2e5   :  { %v953_v58 = vrot.slane %v952_v51, 4 }
 0x2e7   :  { %v954_v54 = vadd.f32 %v953_v58, %v952_v51 }
 0x2e9   :  { %v955_v57 = vrot.slane %v954_v54, 2 }
 0x2eb   :  { %v956_v38 = vadd.f32 %v955_v57, %v954_v54 }
 0x2ed   :  { %v957_v63 = vrot.slane %v956_v38, 1 }
 0x2ef   :  { %v958_v1 = vadd.f32 %v957_v63, %v956_v38 }
 0x2f1   :  { %v959_v0 = vmul.f32 0.0078125, %v958_v1 }
 0x2f3   :  { %v962_v2 = vadd.f32 1e-05, %v959_v0 }
 0x2f5   :  { %2174 = vrsqrt.f32 %v962_v2 }
 0x302   :  { %v2175_v3 = vpop.eup %2174 }
 0x303   :  { %v964_v5 = vmul.f32 %v2175_v3, %v960_v44 }
 0x305   :  { %v968_v61 = vrot.slane %v964_v5, %v429_v32 }
 0x307   :  { %v2441_v6 = vmul.f32 %v968_v61, %v906_v8  ;;  %v2443_v7 = vmul.f32 %v968_v61, %v907_v9  ;;  %v971_v59 = vmul.f32 %v968_v61, %v908_v4  ;;  %v972_v10 = vmul.f32 %v968_v61, %v909_v14 }
 0x308   :  { %v973_v19 = vmul.f32 %v968_v61, %v910_v15  ;;  %v974_v13 = vmul.f32 %v968_v61, %v911_v22  ;;  %v975_v17 = vmul.f32 %v968_v61, %v912_v23  ;;  %v976_v24 = vmul.f32 %v968_v61, %v913_v30 }
 0x309   :  { %v977_v28 = vmul.f32 %v968_v61, %v914_v16  ;;  %v978_v27 = vmul.f32 %v968_v61, %v915_v35  ;;  %v979_v21 = vmul.f32 %v968_v61, %v916_v47  ;;  %v980_v25 = vmul.f32 %v968_v61, %v917_v50 }
 0x30a   :  { %v981_v34 = vmul.f32 %v968_v61, %v918_v45  ;;  %v982_v12 = vmul.f32 %v968_v61, %v919_v55  ;;  %v983_v31 = vmul.f32 %v968_v61, %v920_v60  ;;  %v984_v32 = vmul.f32 %v968_v61, %v921_v62 }
 0x30b   :  { %v991_v8 = vadd.f32 %v2445_v11, %v971_v59  ;;  %v992_v9 = vadd.f32 %v2445_v11, %v972_v10  ;;  %v993_v4 = vadd.f32 %v2445_v11, %v973_v19  ;;  %v994_v14 = vadd.f32 %v2445_v11, %v974_v13 }
 0x30c   :  { %v995_v15 = vadd.f32 %v2445_v11, %v975_v17  ;;  %v996_v22 = vadd.f32 %v2445_v11, %v976_v24  ;;  %v997_v23 = vadd.f32 %v2445_v11, %v977_v28  ;;  %v998_v30 = vadd.f32 %v2445_v11, %v978_v27  ;;  %v1946_v28 = vpop.f32.mrf.mxu0 }
 0x30d   :  { %v999_v16 = vadd.f32 %v2445_v11, %v979_v21  ;;  %v1000_v35 = vadd.f32 %v2445_v11, %v980_v25  ;;  %v1001_v18 = vadd.f32 %v2445_v11, %v981_v34  ;;  %v1002_v42 = vadd.f32 %v2445_v11, %v982_v12 }
 0x30e   :  { %v1003_v47 = vadd.f32 %v2445_v11, %v983_v31  ;;  %v1004_v20 = vadd.f32 %v2445_v11, %v984_v32  ;;  %v1007_v26 = vmax.f32 %v991_v8, 0.0  ;;  %v1008_v50 = vmax.f32 %v992_v9, 0.0  ;;  %v1947_v27 = vpop.f32.mrf.mxu0 }
 0x30f   :  { %v1009_v36 = vmax.f32 %v993_v4, 0.0  ;;  %v1010_v29 = vmax.f32 %v994_v14, 0.0  ;;  %v1011_v45 = vmax.f32 %v995_v15, 0.0  ;;  %v1012_v46 = vmax.f32 %v996_v22, 0.0 }
 0x310   :  { %v1013_v33 = vmax.f32 %v997_v23, 0.0  ;;  %v1014_v55 = vmax.f32 %v998_v30, 0.0  ;;  %v1015_v56 = vmax.f32 %v999_v16, 0.0  ;;  %v1016_v41 = vmax.f32 %v1000_v35, 0.0  ;;  %v1949_v21 = vpop.f32.mrf.mxu0 }
 0x311   :  { %v1017_v60 = vmax.f32 %v1001_v18, 0.0  ;;  %v1018_v52 = vmax.f32 %v1002_v42, 0.0  ;;  %v1019_v49 = vmax.f32 %v1003_v47, 0.0  ;;  %v1020_v62 = vmax.f32 %v1004_v20, 0.0 }
 0x312   :  { %v1836_v39 = vpack.c.bf16 %v1007_v26, %v1007_v26  ;;  %v1837_v37 = vpack.c.bf16 %v1008_v50, %v1008_v50  ;;  %v1838_v40 = vpack.c.bf16 %v1009_v36, %v1009_v36  ;;  %v1839_v43 = vpack.c.bf16 %v1010_v29, %v1010_v29  ;;  %v1950_v25 = vpop.f32.mrf.mxu0 }
 0x313   :  { %v1840_v53 = vpack.c.bf16 %v1011_v45, %v1011_v45  ;;  %v1841_v48 = vpack.c.bf16 %v1012_v46, %v1012_v46  ;;  %v1842_v51 = vpack.c.bf16 %v1013_v33, %v1013_v33  ;;  %v1843_v58 = vpack.c.bf16 %v1014_v55, %v1014_v55  ;;  %v2467_v33 = vld [vmem:[#allocation11 + $0x4] ss:$0 sm:$0xff] }
 0x314   :  { %v1844_v54 = vpack.c.bf16 %v1015_v56, %v1015_v56  ;;  %v1845_v57 = vpack.c.bf16 %v1016_v41, %v1016_v41  ;;  %v1846_v38 = vpack.c.bf16 %v1017_v60, %v1017_v60  ;;  %v1847_v63 = vpack.c.bf16 %v1018_v52, %v1018_v52  ;;  %1087 = vst [vmem:[#allocation2 + $0x20] sm:$0xf] %v1836_v39  ;;  %v1952_v34 = vpop.f32.mrf.mxu0 }
 0x315   :  { %1088 = vst [vmem:[#allocation2 + $0x2c] sm:$0xf] %v1837_v37  ;;  %1089 = vst [vmem:[#allocation2 + $0x38] sm:$0xf] %v1838_v40  ;;  %v1848_v1 = vpack.c.bf16 %v1019_v49, %v1019_v49  ;;  %v1849_v0 = vpack.c.bf16 %v1020_v62, %v1020_v62  ;;  %v989_v2 = vadd.f32 %v2445_v11, %v2441_v6 }
 0x316   :  { %1090 = vst [vmem:[#allocation2 + $0x44] sm:$0xf] %v1839_v43  ;;  %1091 = vst [vmem:[#allocation2 + $0x50] sm:$0xf] %v1840_v53  ;;  %v990_v44 = vadd.f32 %v2445_v11, %v2443_v7  ;;  %v1953_v12 = vpop.f32.mrf.mxu0  ;;  %v1948_v46 = vadd.f32 %v1947_v27, %v1946_v28  ;;  %v1951_v52 = vadd.f32 %v1950_v25, %v1949_v21 }
 0x317   :  { %1092 = vst [vmem:[#allocation2 + $0x5c] sm:$0xf] %v1841_v48  ;;  %1093 = vst [vmem:[#allocation2 + $0x68] sm:$0xf] %v1842_v51  ;;  %v1005_v3 = vmax.f32 %v989_v2, 0.0  ;;  %v1954_v29 = vadd.f32 %v1953_v12, %v1952_v34 }
 0x318   :  { %1094 = vst [vmem:[#allocation2 + $0x74] sm:$0xf] %v1843_v58  ;;  %1095 = vst [vmem:[#allocation2 + $0x80] sm:$0xf] %v1844_v54  ;;  %v1006_v5 = vmax.f32 %v990_v44, 0.0  ;;  %v1955_v31 = vpop.f32.mrf.mxu0  ;;  %v1493_v62 = vadd.f32 %v1948_v46, %v2467_v33  ;;  %v1496_v54 = vadd.f32 %v1951_v52, %v2467_v33 }
 0x319   :  { %1096 = vst [vmem:[#allocation2 + $0x8c] sm:$0xf] %v1845_v57  ;;  %1097 = vst [vmem:[#allocation2 + $0x98] sm:$0xf] %v1846_v38  ;;  %v1834_v61 = vpack.c.bf16 %v1005_v3, %v1005_v3  ;;  %v1501_v56 = vadd.f32 %v1954_v29, %v2467_v33 }
 0x31a   :  { %1098 = vst [vmem:[#allocation2 + $0xa4] sm:$0xf] %v1847_v63  ;;  %1099 = vst [vmem:[#allocation2 + $0xb0] sm:$0xf] %v1848_v1  ;;  %v1835_v59 = vpack.c.bf16 %v1006_v5, %v1006_v5  ;;  %v1956_v32 = vpop.f32.mrf.mxu0 }
 0x31b   :  { %1100 = vst [vmem:[#allocation2 + $0xbc] sm:$0xf] %v1849_v0  ;;  %1085 = vst [vmem:[#allocation2 + $0x8] sm:$0xf] %v1834_v61  ;;  %v1957_v55 = vadd.f32 %v1956_v32, %v1955_v31 }
 0x31c   :  { %1086 = vst [vmem:[#allocation2 + $0x14] sm:$0xf] %v1835_v59  ;;  %v2165_v10 = vld [vmem:[#allocation2 + $0x20] ss:$12 sps:$4 sm:$0xff]   ;;  %v1958_v8 = vpop.f32.mrf.mxu0 }
 0x31d   :  { %v2166_v13 = vld [vmem:[#allocation2 + $0x38] ss:$12 sps:$4 sm:$0xff]   ;;  %v1504_v43 = vadd.f32 %v1957_v55, %v2467_v33 }
 0x31e   :  { %v2167_v6 = vld [vmem:[#allocation2 + $0x50] ss:$12 sps:$4 sm:$0xff]   ;;  %v1959_v9 = vpop.f32.mrf.mxu0 }
 0x31f   :  { %v2168_v7 = vld [vmem:[#allocation2 + $0x68] ss:$12 sps:$4 sm:$0xff]   ;;  %v1960_v51 = vadd.f32 %v1959_v9, %v1958_v8 }
 0x320   :  { %v2169_v11 = vld [vmem:[#allocation2 + $0x80] ss:$12 sps:$4 sm:$0xff]   ;;  %v1961_v4 = vpop.f32.mrf.mxu0 }
 0x321   :  { %v2170_v17 = vld [vmem:[#allocation2 + $0x98] ss:$12 sps:$4 sm:$0xff]   ;;  %v1509_v5 = vadd.f32 %v1960_v51, %v2467_v33 }
 0x322   :  { %v2171_v24 = vld [vmem:[#allocation2 + $0xb0] ss:$12 sps:$4 sm:$0xff]   ;;  %v1962_v14 = vpop.f32.mrf.mxu0 }
 0x323   :  { %v2164_v19 = vld [vmem:[#allocation2 + $0x8] ss:$12 sps:$4 sm:$0xff]   ;;  %v1963_v44 = vadd.f32 %v1962_v14, %v1961_v4 }
 0x324   :  { %2058 = vmatprep.mubr.bf16.mxu1 %v2164_v19  ;;  %v1964_v15 = vpop.f32.mrf.mxu0 }
 0x325   :  { %2059 = vmatmul.mubr.bf16.vlgmr.msra.gmra.mxu1 %v2165_v10 }
 0x326   :  { %2062 = vmatprep.mubr.bf16.mxu1 %v2166_v13  ;;  %v1965_v22 = vpop.f32.mrf.mxu0 }
 0x327   :  { %v1966_v37 = vadd.f32 %v1965_v22, %v1964_v15 }
 0x328   :  { %v1967_v23 = vpop.f32.mrf.mxu0 }
 0x329   :  { %v1517_v1 = vadd.f32 %v1966_v37, %v2467_v33 }
 0x32a   :  { %v1968_v30 = vpop.f32.mrf.mxu0 }
 0x32b   :  { %v1969_v38 = vadd.f32 %v1968_v30, %v1967_v23 }
 0x32c   :  { %v1970_v16 = vpop.f32.mrf.mxu0 }
 0x32d   :  { %2063 = vmatmul.mubr.bf16.gmra.mxu1 %v2167_v6  ;;  %v1520_v19 = vadd.f32 %v1969_v38, %v2467_v33 }
 0x32e   :  { %2066 = vmatprep.mubr.bf16.mxu1 %v2168_v7  ;;  %v1971_v35 = vpop.f32.mrf.mxu0 }
 0x32f   :  { %v1972_v7 = vadd.f32 %v1971_v35, %v1970_v16 }
 0x330   :  { %v1973_v18 = vpop.f32.mrf.mxu0 }
 0x331   :  { %v1525_v32 = vadd.f32 %v1972_v7, %v2467_v33 }
 0x332   :  { %v1974_v42 = vpop.f32.mrf.mxu0 }
 0x333   :  { %v1975_v12 = vadd.f32 %v1974_v42, %v1973_v18 }
 0x334   :  { %v1976_v47 = vpop.f32.mrf.mxu0 }
 0x335   :  { %2067 = vmatmul.mubr.bf16.gmra.mxu1 %v2169_v11  ;;  %v1528_v16 = vadd.f32 %v1975_v12, %v2467_v33 }
 0x336   :  { %2070 = vmatprep.mubr.bf16.mxu1 %v2170_v17  ;;  %v1977_v20 = vpop.f32.mrf.mxu0  ;;  %v1512_v17 = vadd.f32 %v1963_v44, %v2467_v33 }
 0x337   :  { %v1978_v59 = vadd.f32 %v1977_v20, %v1976_v47 }
 0x338   :  { %v1979_v26 = vpop.f32.mrf.mxu0 }
 0x339   :  { %v1533_v21 = vadd.f32 %v1978_v59, %v2467_v33 }
 0x33a   :  { %v1980_v50 = vpop.f32.mrf.mxu0 }
 0x33b   :  { %v1981_v28 = vadd.f32 %v1980_v50, %v1979_v26 }
 0x33c   :  { %v2465_v36 = vpop.f32.mrf.mxu0 }
 0x33d   :  { %2071 = vmatmul.mubr.bf16.gmra.mxu1 %v2171_v24  ;;  %v1536_v14 = vadd.f32 %v1981_v28, %v2467_v33 }
 0x33e   :  { %v1983_v45 = vpop.f32.mrf.mxu0 }
 0x33f   :  { %v1984_v23 = vadd.f32 %v1983_v45, %v2465_v36 }
 0x340   :  { %v2470_v41 = vpop.f32.mrf.mxu0 }
 0x341   :  { %v1541_v29 = vadd.f32 %v1984_v23, %v2467_v33 }
 0x342   :  { %v1986_v53 = vpop.f32.mrf.mxu0 }
 0x343   :  { %v1987_v26 = vadd.f32 %v1986_v53, %v2470_v41 }
 0x344   :  { %v1988_v0 = vpop.f32.mrf.mxu0 }
 0x346   :  { %v1989_v13 = vpop.f32.mrf.mxu0 }
 0x347   :  { %v1990_v9 = vadd.f32 %v1989_v13, %v1988_v0 }
 0x348   :  { %v1991_v25 = vpop.f32.mrf.mxu0 }
 0x349   :  { %v1549_v47 = vadd.f32 %v1990_v9, %v2467_v33 }
 0x34a   :  { %v1992_v15 = vpop.f32.mrf.mxu0 }
 0x34b   :  { %v1993_v18 = vadd.f32 %v1992_v15, %v1991_v25 }
 0x34d   :  { %v1552_v45 = vadd.f32 %v1993_v18, %v2467_v33 }
 0x3e5   :  { %v2060_v60 = vpop.f32.mrf.mxu1 }
 0x3e6   :  { %v1598_v49 = vadd.f32 %v2060_v60, %v1501_v56  ;;  %v1544_v60 = vadd.f32 %v1987_v26, %v2467_v33 }
 0x3e7   :  { %v1589_v39 = vpop.f32.mrf.mxu1 }
 0x3e8   :  { %1654 = vst [vmem:[#allocation12 + $0x10] sm:$0xff] %v1598_v49  ;;  %v1590_v40 = vadd.f32 %v1589_v39, %v1493_v62 }
 0x3e9   :  { %v2061_v48 = vpop.f32.mrf.mxu1 }
 0x3ea   :  { %1652 = vst [vmem:[#allocation12] sm:$0xff] %v1590_v40  ;;  %v1601_v58 = vadd.f32 %v2061_v48, %v1504_v43 }
 0x3eb   :  { %v1592_v57 = vpop.f32.mrf.mxu1 }
 0x3ec   :  { %1655 = vst [vmem:[#allocation12 + $0x18] sm:$0xff] %v1601_v58  ;;  %v1593_v63 = vadd.f32 %v1592_v57, %v1496_v54 }
 0x3ed   :  { %v2064_v2 = vpop.f32.mrf.mxu1 }
 0x3ee   :  { %1653 = vst [vmem:[#allocation12 + $0x8] sm:$0xff] %v1593_v63  ;;  %v1614_v3 = vadd.f32 %v2064_v2, %v1517_v1 }
 0x3ef   :  { %v1605_v61 = vpop.f32.mrf.mxu1 }
 0x3f0   :  { %1658 = vst [vmem:[#allocation12 + $0x30] sm:$0xff] %v1614_v3  ;;  %v1606_v10 = vadd.f32 %v1605_v61, %v1509_v5 }
 0x3f1   :  { %v2065_v6 = vpop.f32.mrf.mxu1 }
 0x3f2   :  { %1656 = vst [vmem:[#allocation12 + $0x20] sm:$0xff] %v1606_v10  ;;  %v1617_v11 = vadd.f32 %v2065_v6, %v1520_v19 }
 0x3f3   :  { %v1608_v24 = vpop.f32.mrf.mxu1 }
 0x3f4   :  { %1659 = vst [vmem:[#allocation12 + $0x38] sm:$0xff] %v1617_v11  ;;  %v1609_v27 = vadd.f32 %v1608_v24, %v1512_v17 }
 0x3f5   :  { %v2068_v34 = vpop.f32.mrf.mxu1 }
 0x3f6   :  { %1657 = vst [vmem:[#allocation12 + $0x28] sm:$0xff] %v1609_v27  ;;  %v1630_v31 = vadd.f32 %v2068_v34, %v1533_v21 }
 0x3f7   :  { %v1621_v8 = vpop.f32.mrf.mxu1 }
 0x3f8   :  { %1662 = vst [vmem:[#allocation12 + $0x50] sm:$0xff] %v1630_v31  ;;  %v1622_v4 = vadd.f32 %v1621_v8, %v1525_v32 }
 0x3f9   :  { %v2069_v22 = vpop.f32.mrf.mxu1 }
 0x3fa   :  { %1660 = vst [vmem:[#allocation12 + $0x40] sm:$0xff] %v1622_v4  ;;  %v1633_v30 = vadd.f32 %v2069_v22, %v1536_v14 }
 0x3fb   :  { %v1624_v35 = vpop.f32.mrf.mxu1 }
 0x3fc   :  { %1663 = vst [vmem:[#allocation12 + $0x58] sm:$0xff] %v1633_v30  ;;  %v1625_v42 = vadd.f32 %v1624_v35, %v1528_v16 }
 0x3fd   :  { %v2072_v20 = vpop.f32.mrf.mxu1 }
 0x3fe   :  { %1661 = vst [vmem:[#allocation12 + $0x48] sm:$0xff] %v1625_v42  ;;  %v1646_v50 = vadd.f32 %v2072_v20, %v1549_v47 }
 0x3ff   :  { %v1637_v46 = vpop.f32.mrf.mxu1 }
 0x400   :  { %1666 = vst [vmem:[#allocation12 + $0x70] sm:$0xff] %v1646_v50  ;;  %v1638_v36 = vadd.f32 %v1637_v46, %v1541_v29 }
 0x401   :  { %v2073_v55 = vpop.f32.mrf.mxu1 }
 0x402   :  { %1664 = vst [vmem:[#allocation12 + $0x60] sm:$0xff] %v1638_v36  ;;  %v1649_v56 = vadd.f32 %v2073_v55, %v1552_v45 }
 0x403   :  { %v1640_v52 = vpop.f32.mrf.mxu1 }
 0x404   :  { %1667 = vst [vmem:[#allocation12 + $0x78] sm:$0xff] %v1649_v56  ;;  %v1641_v41 = vadd.f32 %v1640_v52, %v1544_v60 }
 0x406   :  { %1665 = vst [vmem:[#allocation12 + $0x68] sm:$0xff] %v1641_v41 }
 0x407   :  { %2287 = shalt.err (!%p2284_p1)
}
 0x408   :  { %s2312_s18 = smov 128   ;;  %s2313_s19 = smov 8  }
 0x409   :  { %1679 = dma.vmem_to_hbm [thread:$0]  %s1674_s4, 2048, %s2497_s5, [#allocation5], %s2312_s18, %s2312_s18, %s2313_s19  }
 0x40a   :  { %2302 = dma.done.wait [#allocation5], 2048  }
 0x40b   :  { %2303 = vsyncadd [#allocation5], 4294965248 }
 0x40c   :  { %1683 = vsyncpa [#allocation4], 1 }
 0x40d   :  { %1684 = vsyncpa [#allocation7], 1 }
 0x40e   :  { %1685 = vsyncpa [#allocation10], 1 }
 0x40f   :  { %1686 = vsyncpa [#allocation5], 1 }

</bundles_post_ra>
